<compile_context>
chip_gen: v5e
topology: v5e:2x2
jax: 0.10.0
libtpu: 0.0.40
codegen_flags: <defaults>
</compile_context>

<pallas_src>
import functools

import jax
import jax.numpy as jnp
import numpy as np
from jax import lax
from jax.experimental import pallas as pl
from jax.experimental.pallas import tpu as pltpu


_MASK_VALUE = -1e30                      # exp(_MASK - m) underflows to exactly 0
_VMEM_TILE_BUDGET = 40 * 1024 * 1024     # headroom under v7x's 64 MiB / TC
_LANE = 128


def _round_up(x, m):
    return (x + m - 1) // m * m


def _head_group_candidates(h, d):
    """Head-group sizes hg (divisors of h) whose output slab hg*d is lane-legal
    (multiple of 128 lanes, or all heads)."""
    cands = [g for g in range(h, 0, -1)
             if h % g == 0 and (g == h or (g * d) % _LANE == 0)]
    return cands or [h]


def _vmem_estimate(hg, tq, tk, d, itemsize):
    """Rough VMEM bytes: double-buffered q/kT/v/o tiles (lane-padded), live f32
    score/prob tiles, f32 scratch."""
    d_lane = _round_up(d, _LANE)
    tk_lane = _round_up(tk, _LANE)
    c_lane = _round_up(hg * d, _LANE)
    tiles = 2 * itemsize * (hg * tq * d_lane               # q
                            + hg * _round_up(d, 8) * tk_lane  # k^T
                            + hg * tk * d_lane              # v
                            + tq * c_lane)                  # o
    live = 2 * hg * tq * tk_lane * 4                        # s and p (f32)
    scratch = hg * tq * d_lane * 4 + 2 * hg * _round_up(tq, _LANE) * 4
    return tiles + live + scratch


def _tile_candidates(n_pad, cap):
    c = [t for t in range(_LANE, min(n_pad, cap) + 1, _LANE) if n_pad % t == 0]
    return sorted(c, reverse=True) if c else [n_pad]


def _choose_config(h, n, d, itemsize):
    """Pick (head_group, tq, tk, n_pad) under the VMEM budget."""
    hg_cands = _head_group_candidates(h, d)

    if n <= 256:
        t = max(_round_up(n, 8), 8)
        for hg in hg_cands:
            if _vmem_estimate(hg, t, t, d, itemsize) <= _VMEM_TILE_BUDGET:
                return hg, t, t, t
        return hg_cands[-1], t, t, t

    # Pad the sequence so tiles divide it; prefer the padding base that allows
    # the largest q tile (less K/V re-streaming), tie-break on less padding.
    best = None
    for base in (256, 128):
        n_pad = _round_up(n, base)
        tqs = _tile_candidates(n_pad, 512)
        tks = _tile_candidates(n_pad, 256)
        key = (tqs[0], -n_pad)
        if best is None or key > best[0]:
            best = (key, (n_pad, tqs, tks))
    n_pad, tqs, tks = best[1]

    for tq in tqs:
        for hg in hg_cands:
            for tk in tks:
                if _vmem_estimate(hg, tq, tk, d, itemsize) <= _VMEM_TILE_BUDGET:
                    return hg, tq, tk, n_pad
    return hg_cands[-1], tqs[-1], tks[-1], n_pad


# ---------------------------------------------------------------------------
# Pallas kernel: non-causal flash-attention forward, one head-group per step.
# Grid: (batch, head_group, q_tile, kv_tile); kv axis last / "arbitrary".
# ---------------------------------------------------------------------------
def _flash_attn_kernel(q_ref, k_ref, v_ref, o_ref, m_sc, l_sc, acc_sc,
                       *, n_real, tk, masked):
    kv = pl.program_id(3)
    hg, tq, d = acc_sc.shape

    @pl.when(kv == 0)
    def _():
        m_sc[...] = jnp.full(m_sc.shape, -jnp.inf, jnp.float32)
        l_sc[...] = jnp.zeros(l_sc.shape, jnp.float32)
        acc_sc[...] = jnp.zeros(acc_sc.shape, jnp.float32)

    q = q_ref[0]       # (hg, tq, d)   1/sqrt(d) already folded into Wq
    kT = k_ref[0]      # (hg, d, tk)   pre-transposed: tk lane-dense, no vxpose
    v = v_ref[0]       # (hg, tk, d)

    # scores for the whole head group -> (hg, tq, tk), f32 accumulation on MXU
    s = jnp.einsum("hqd,hdk->hqk", q, kT, preferred_element_type=jnp.float32)

    if masked:  # padded keys (ragged N) get a large negative bias
        kv_ids = kv * tk + lax.broadcasted_iota(jnp.int32, (1, tq, tk), 2)
        s = jnp.where(kv_ids < n_real, s, _MASK_VALUE)

    m_prev = m_sc[...]                                   # (hg, tq)
    m_new = jnp.maximum(m_prev, s.max(axis=-1))          # (hg, tq)
    alpha = jnp.exp(m_prev - m_new)                      # (hg, tq)
    p = jnp.exp(s - m_new[:, :, None])                   # (hg, tq, tk)

    l_sc[...] = alpha * l_sc[...] + p.sum(axis=-1)
    acc_sc[...] = alpha[:, :, None] * acc_sc[...] + jnp.einsum(
        "hqk,hkd->hqd", p.astype(v.dtype), v, preferred_element_type=jnp.float32)
    m_sc[...] = m_new

    @pl.when(kv == pl.num_programs(3) - 1)
    def _():
        inv = pl.reciprocal(l_sc[...], approx=True)              # EUP, not VPU
        o = (acc_sc[...] * inv[:, :, None]).astype(o_ref.dtype)  # (hg, tq, d)
        # lane-dense store: (hg, tq, d) -> (tq, hg*d); once per q-tile,
        # off the inner kv loop.
        for hh in range(hg):
            o_ref[0, :, hh * d:(hh + 1) * d] = o[hh]


def _mha_pallas(q, k, v):
    """q: [B,H,N,d], k: [B,H,d,N] (pre-transposed), v: [B,H,N,d]
       -> o: [B,N,H*d]  (softmax(q @ k) @ v, non-causal)."""
    b, h, n, d = q.shape
    itemsize = np.dtype(q.dtype).itemsize
    hg, tq, tk, n_pad = _choose_config(h, n, d, itemsize)

    if n_pad != n:
        pad = n_pad - n
        q = jnp.pad(q, ((0, 0), (0, 0), (0, pad), (0, 0)))
        k = jnp.pad(k, ((0, 0), (0, 0), (0, 0), (0, pad)))
        v = jnp.pad(v, ((0, 0), (0, 0), (0, pad), (0, 0)))

    grid = (b, h // hg, n_pad // tq, n_pad // tk)

    q_spec = pl.BlockSpec((1, hg, tq, d), lambda bi, gi, qi, ki: (bi, gi, qi, 0))
    k_spec = pl.BlockSpec((1, hg, d, tk), lambda bi, gi, qi, ki: (bi, gi, 0, ki))
    v_spec = pl.BlockSpec((1, hg, tk, d), lambda bi, gi, qi, ki: (bi, gi, ki, 0))
    o_spec = pl.BlockSpec((1, tq, hg * d), lambda bi, gi, qi, ki: (bi, qi, gi))

    kv_reps = n_pad // tq   # K/V are re-streamed once per q tile
    cost = pl.CostEstimate(
        flops=4 * b * h * n_pad * n_pad * d,
        transcendentals=b * h * n_pad * n_pad,
        bytes_accessed=int(b * h * n_pad * d * itemsize * (2 + 2 * kv_reps)),
    )

    kernel = functools.partial(_flash_attn_kernel, n_real=n, tk=tk,
                               masked=(n_pad != n))

    out = pl.pallas_call(
        kernel,
        out_shape=jax.ShapeDtypeStruct((b, n_pad, h * d), q.dtype),
        grid_spec=pltpu.PrefetchScalarGridSpec(
            num_scalar_prefetch=0,
            grid=grid,
            in_specs=[q_spec, k_spec, v_spec],
            out_specs=o_spec,
            scratch_shapes=[
                pltpu.VMEM((hg, tq), jnp.float32),      # running max
                pltpu.VMEM((hg, tq), jnp.float32),      # running denom
                pltpu.VMEM((hg, tq, d), jnp.float32),   # output accumulator
            ],
        ),
        compiler_params=pltpu.CompilerParams(
            dimension_semantics=("parallel", "parallel", "parallel", "arbitrary"),
            vmem_limit_bytes=64 * 1024 * 1024,
        ),
        cost_estimate=cost,
    )(q, k, v)

    return out if n_pad == n else out[:, :n]


# ---------------------------------------------------------------------------
# Module wrapper (projections are plain-JAX glue matmuls).
# ---------------------------------------------------------------------------
def init_params(key, dim):
    """qkv: Linear(dim, 3*dim, bias=False); proj: Linear(dim, dim, bias=True)."""
    k1, k2, k3 = jax.random.split(key, 3)
    return {
        "w_qkv": (0.02 * jax.random.normal(k1, (3 * dim, dim))).astype(jnp.float32),
        "w_proj": (0.02 * jax.random.normal(k2, (dim, dim))).astype(jnp.float32),
        "b_proj": (0.02 * jax.random.normal(k3, (dim,))).astype(jnp.float32),
    }


def attention_forward(x, params, num_heads, compute_dtype=jnp.bfloat16):
    """Forward matching Attention(dim, num_heads)(x) at eval (dropout p=0)."""
    b, n, c = x.shape
    d = c // num_heads
    scale = float(d) ** -0.5

    # Fold 1/sqrt(d) into the q rows of the qkv weight in f32, before any cast.
    w_qkv = jnp.concatenate([params["w_qkv"][:c] * scale, params["w_qkv"][c:]], axis=0)
    qkv = (x @ w_qkv.T).reshape(b, n, 3, num_heads, d)                # [B,N,3,H,d]

    q = qkv[:, :, 0].transpose(0, 2, 1, 3).astype(compute_dtype)      # [B,H,N,d]
    k = qkv[:, :, 1].transpose(0, 2, 3, 1).astype(compute_dtype)      # [B,H,d,N]
    v = qkv[:, :, 2].transpose(0, 2, 1, 3).astype(compute_dtype)      # [B,H,N,d]

    # Hot path: bf16 flash attention in Pallas, lane-dense (B, N, C) output.
    o = _mha_pallas(q, k, v).astype(x.dtype)                          # [B,N,C]

    # attn_drop / proj_drop are identity at the module's default p=0.0.
    return o @ params["w_proj"].T + params["b_proj"]


# ---------------------------------------------------------------------------
# Pure-JAX reference (matches the PyTorch forward exactly, f32).
# ---------------------------------------------------------------------------
def _reference(x, params, num_heads):
    b, n, c = x.shape
    d = c // num_heads
    scale = float(d) ** -0.5
    qkv = (x @ params["w_qkv"].T).reshape(b, n, 3, num_heads, d).transpose(2, 0, 3, 1, 4)
    q, k, v = qkv[0] * scale, qkv[1], qkv[2]
    attn = jax.nn.softmax(jnp.einsum("bhqd,bhkd->bhqk", q, k), axis=-1)
    o = jnp.einsum("bhqk,bhkd->bhqd", attn, v).transpose(0, 2, 1, 3).reshape(b, n, c)
    return o @ params["w_proj"].T + params["b_proj"]


if __name__ == "__main__":
    B, N, DIM, HEADS = 2, 16, 32, 4

    key = jax.random.PRNGKey(0)
    kx, kp = jax.random.split(key)
    x = jax.random.normal(kx, (B, N, DIM), dtype=jnp.float32)
    params = init_params(kp, DIM)

    out = jax.block_until_ready(attention_forward(x, params, HEADS))
    ref = _reference(x, params, HEADS)
    np.testing.assert_allclose(np.asarray(out), np.asarray(ref), rtol=3e-2, atol=3e-3)

    # Ragged sequence length (CLS-token style): exercises the pad + key-mask path.
    x2 = jax.random.normal(jax.random.PRNGKey(1), (B, 13, DIM), dtype=jnp.float32)
    out2 = jax.block_until_ready(attention_forward(x2, params, HEADS))
    ref2 = _reference(x2, params, HEADS)
    np.testing.assert_allclose(np.asarray(out2), np.asarray(ref2), rtol=3e-2, atol=3e-3)

    print("KERNEL_OK")
</pallas_src>

<mosaic_0001>
module attributes {stable_mosaic.version = 11 : i64} {
  func.func @_flash_attn_kernel(%arg0: i32, %arg1: i32, %arg2: i32, %arg3: i32, %arg4: memref<1x4x16x8xbf16, #tpu.memory_space<vmem>>, %arg5: memref<1x4x8x16xbf16, #tpu.memory_space<vmem>>, %arg6: memref<1x4x16x8xbf16, #tpu.memory_space<vmem>>, %arg7: memref<1x16x32xbf16, #tpu.memory_space<vmem>>, %arg8: memref<4x16xf32, #tpu.memory_space<vmem>>, %arg9: memref<4x16xf32, #tpu.memory_space<vmem>>, %arg10: memref<4x16x8xf32, #tpu.memory_space<vmem>>) attributes {dimension_semantics = [#tpu.dimension_semantics<parallel>, #tpu.dimension_semantics<parallel>, #tpu.dimension_semantics<parallel>, #tpu.dimension_semantics<arbitrary>], iteration_bounds = array<i64: 2, 1, 1, 1>, scalar_prefetch = 0 : i64, scratch_operands = 3 : i64, tpu.core_type = #tpu.core_type<tc>, window_params = [{transform_indices = @transform_0, window_bounds = array<i64: 1, 4, 16, 8>}, {transform_indices = @transform_1, window_bounds = array<i64: 1, 4, 8, 16>}, {transform_indices = @transform_2, window_bounds = array<i64: 1, 4, 16, 8>}, {transform_indices = @transform_3, window_bounds = array<i64: 1, 16, 32>}]} {
    %c0_i32 = arith.constant 0 : i32
    %0 = arith.cmpi eq, %arg3, %c0_i32 : i32
    %1 = arith.extui %0 : i1 to i32
    %c0_i32_0 = arith.constant 0 : i32
    %2 = arith.cmpi ne, %1, %c0_i32_0 : i32
    scf.if %2 {
      %cst_31 = arith.constant 0xFF800000 : f32
      %36 = vector.broadcast %cst_31 : f32 to vector<4x16xf32>
      %c0_32 = arith.constant 0 : index
      %c0_33 = arith.constant 0 : index
      %37 = vector.load %arg8[%c0_32, %c0_33] : memref<4x16xf32, #tpu.memory_space<vmem>>, vector<4x16xf32>
      tpu.vector_store %arg8[%c0_32, %c0_33], %36 {strides = array<i32>} : memref<4x16xf32, #tpu.memory_space<vmem>>, vector<4x16xf32>,
      %cst_34 = arith.constant 0.000000e+00 : f32
      %38 = vector.broadcast %cst_34 : f32 to vector<4x16xf32>
      %c0_35 = arith.constant 0 : index
      %c0_36 = arith.constant 0 : index
      %39 = vector.load %arg9[%c0_35, %c0_36] : memref<4x16xf32, #tpu.memory_space<vmem>>, vector<4x16xf32>
      tpu.vector_store %arg9[%c0_35, %c0_36], %38 {strides = array<i32>} : memref<4x16xf32, #tpu.memory_space<vmem>>, vector<4x16xf32>,
      %cst_37 = arith.constant 0.000000e+00 : f32
      %40 = vector.broadcast %cst_37 : f32 to vector<4x16x8xf32>
      %c0_38 = arith.constant 0 : index
      %c0_39 = arith.constant 0 : index
      %c0_40 = arith.constant 0 : index
      %41 = vector.load %arg10[%c0_38, %c0_39, %c0_40] : memref<4x16x8xf32, #tpu.memory_space<vmem>>, vector<4x16x8xf32>
      tpu.vector_store %arg10[%c0_38, %c0_39, %c0_40], %40 {strides = array<i32>} : memref<4x16x8xf32, #tpu.memory_space<vmem>>, vector<4x16x8xf32>,
    } else {
    }
    %c0 = arith.constant 0 : index
    %c0_1 = arith.constant 0 : index
    %c0_2 = arith.constant 0 : index
    %c0_3 = arith.constant 0 : index
    %3 = vector.load %arg4[%c0, %c0_1, %c0_2, %c0_3] : memref<1x4x16x8xbf16, #tpu.memory_space<vmem>>, vector<1x4x16x8xbf16>
    %4 = vector.shape_cast %3 : vector<1x4x16x8xbf16> to vector<4x16x8xbf16>
    %c0_4 = arith.constant 0 : index
    %c0_5 = arith.constant 0 : index
    %c0_6 = arith.constant 0 : index
    %c0_7 = arith.constant 0 : index
    %5 = vector.load %arg5[%c0_4, %c0_5, %c0_6, %c0_7] : memref<1x4x8x16xbf16, #tpu.memory_space<vmem>>, vector<1x4x8x16xbf16>
    %6 = vector.shape_cast %5 : vector<1x4x8x16xbf16> to vector<4x8x16xbf16>
    %c0_8 = arith.constant 0 : index
    %c0_9 = arith.constant 0 : index
    %c0_10 = arith.constant 0 : index
    %c0_11 = arith.constant 0 : index
    %7 = vector.load %arg6[%c0_8, %c0_9, %c0_10, %c0_11] : memref<1x4x16x8xbf16, #tpu.memory_space<vmem>>, vector<1x4x16x8xbf16>
    %8 = vector.shape_cast %7 : vector<1x4x16x8xbf16> to vector<4x16x8xbf16>
    "tpu.trace_start"() <{level = 10 : i32, message = "hqd,hdk->hqk"}> : () -> ()
    %cst = arith.constant dense<0.000000e+00> : vector<4x16x16xf32>
    %9 = tpu.matmul %4, %6, %cst {dimension_numbers = #tpu.dot_dimension_numbers<[2], [1], [1], [2], [0, 0, 0, 1, 1, 2], [0], [0]>} : vector<4x16x8xbf16>, vector<4x8x16xbf16>, vector<4x16x16xf32> -> vector<4x16x16xf32>
    "tpu.trace_stop"() : () -> ()
    %c0_12 = arith.constant 0 : index
    %c0_13 = arith.constant 0 : index
    %10 = vector.load %arg8[%c0_12, %c0_13] : memref<4x16xf32, #tpu.memory_space<vmem>>, vector<4x16xf32>
    %cst_14 = arith.constant dense<0xFF800000> : vector<4x16xf32>
    %11 = vector.multi_reduction <maximumf>, %9, %cst_14 [2] : vector<4x16x16xf32> to vector<4x16xf32>
    %12 = arith.maximumf %10, %11 : vector<4x16xf32>
    %13 = arith.subf %10, %12 : vector<4x16xf32>
    %14 = math.exp %13 : vector<4x16xf32>
    %15 = vector.shape_cast %12 : vector<4x16xf32> to vector<4x16x1xf32>
    %16 = vector.broadcast %15 : vector<4x16x1xf32> to vector<4x16x16xf32>
    %17 = arith.subf %9, %16 : vector<4x16x16xf32>
    %18 = math.exp %17 : vector<4x16x16xf32>
    %c0_15 = arith.constant 0 : index
    %c0_16 = arith.constant 0 : index
    %19 = vector.load %arg9[%c0_15, %c0_16] : memref<4x16xf32, #tpu.memory_space<vmem>>, vector<4x16xf32>
    %20 = arith.mulf %14, %19 : vector<4x16xf32>
    %cst_17 = arith.constant dense<0.000000e+00> : vector<4x16xf32>
    %21 = vector.multi_reduction <add>, %18, %cst_17 [2] : vector<4x16x16xf32> to vector<4x16xf32>
    %22 = arith.addf %20, %21 : vector<4x16xf32>
    %c0_18 = arith.constant 0 : index
    %c0_19 = arith.constant 0 : index
    %23 = vector.load %arg9[%c0_18, %c0_19] : memref<4x16xf32, #tpu.memory_space<vmem>>, vector<4x16xf32>
    tpu.vector_store %arg9[%c0_18, %c0_19], %22 {strides = array<i32>} : memref<4x16xf32, #tpu.memory_space<vmem>>, vector<4x16xf32>,
    %24 = vector.shape_cast %14 : vector<4x16xf32> to vector<4x16x1xf32>
    %c0_20 = arith.constant 0 : index
    %c0_21 = arith.constant 0 : index
    %c0_22 = arith.constant 0 : index
    %25 = vector.load %arg10[%c0_20, %c0_21, %c0_22] : memref<4x16x8xf32, #tpu.memory_space<vmem>>, vector<4x16x8xf32>
    %26 = vector.broadcast %24 : vector<4x16x1xf32> to vector<4x16x8xf32>
    %27 = arith.mulf %26, %25 : vector<4x16x8xf32>
    %28 = arith.truncf %18 : vector<4x16x16xf32> to vector<4x16x16xbf16>
    "tpu.trace_start"() <{level = 10 : i32, message = "hqk,hkd->hqd"}> : () -> ()
    %cst_23 = arith.constant dense<0.000000e+00> : vector<4x16x8xf32>
    %29 = tpu.matmul %28, %8, %cst_23 {dimension_numbers = #tpu.dot_dimension_numbers<[2], [1], [1], [2], [0, 0, 0, 1, 1, 2], [0], [0]>} : vector<4x16x16xbf16>, vector<4x16x8xbf16>, vector<4x16x8xf32> -> vector<4x16x8xf32>
    "tpu.trace_stop"() : () -> ()
    %30 = arith.addf %27, %29 : vector<4x16x8xf32>
    %c0_24 = arith.constant 0 : index
    %c0_25 = arith.constant 0 : index
    %c0_26 = arith.constant 0 : index
    %31 = vector.load %arg10[%c0_24, %c0_25, %c0_26] : memref<4x16x8xf32, #tpu.memory_space<vmem>>, vector<4x16x8xf32>
    tpu.vector_store %arg10[%c0_24, %c0_25, %c0_26], %30 {strides = array<i32>} : memref<4x16x8xf32, #tpu.memory_space<vmem>>, vector<4x16x8xf32>,
    %c0_27 = arith.constant 0 : index
    %c0_28 = arith.constant 0 : index
    %32 = vector.load %arg8[%c0_27, %c0_28] : memref<4x16xf32, #tpu.memory_space<vmem>>, vector<4x16xf32>
    tpu.vector_store %arg8[%c0_27, %c0_28], %12 {strides = array<i32>} : memref<4x16xf32, #tpu.memory_space<vmem>>, vector<4x16xf32>,
    %c0_i32_29 = arith.constant 0 : i32
    %33 = arith.cmpi eq, %arg3, %c0_i32_29 : i32
    %34 = arith.extui %33 : i1 to i32
    %c0_i32_30 = arith.constant 0 : i32
    %35 = arith.cmpi ne, %34, %c0_i32_30 : i32
    scf.if %35 {
      %c0_31 = arith.constant 0 : index
      %c0_32 = arith.constant 0 : index
      %36 = vector.load %arg9[%c0_31, %c0_32] : memref<4x16xf32, #tpu.memory_space<vmem>>, vector<4x16xf32>
      %37 = tpu.reciprocal %36 {approx = true} : vector<4x16xf32> -> vector<4x16xf32>
      %c0_33 = arith.constant 0 : index
      %c0_34 = arith.constant 0 : index
      %c0_35 = arith.constant 0 : index
      %38 = vector.load %arg10[%c0_33, %c0_34, %c0_35] : memref<4x16x8xf32, #tpu.memory_space<vmem>>, vector<4x16x8xf32>
      %39 = vector.shape_cast %37 : vector<4x16xf32> to vector<4x16x1xf32>
      %40 = vector.broadcast %39 : vector<4x16x1xf32> to vector<4x16x8xf32>
      %41 = arith.mulf %38, %40 : vector<4x16x8xf32>
      %42 = arith.truncf %41 : vector<4x16x8xf32> to vector<4x16x8xbf16>
      %43 = vector.extract_strided_slice %42 {offsets = [0, 0, 0], sizes = [1, 16, 8], strides = [1, 1, 1]} : vector<4x16x8xbf16> to vector<1x16x8xbf16>
      %44 = vector.shape_cast %43 : vector<1x16x8xbf16> to vector<16x8xbf16>
      %c0_36 = arith.constant 0 : index
      %c0_37 = arith.constant 0 : index
      %c0_38 = arith.constant 0 : index
      %45 = vector.load %arg7[%c0_36, %c0_37, %c0_38] : memref<1x16x32xbf16, #tpu.memory_space<vmem>>, vector<1x16x8xbf16>
      %46 = vector.shape_cast %45 : vector<1x16x8xbf16> to vector<16x8xbf16>
      %47 = vector.shape_cast %44 : vector<16x8xbf16> to vector<1x16x8xbf16>
      tpu.vector_store %arg7[%c0_36, %c0_37, %c0_38], %47 {strides = array<i32>} : memref<1x16x32xbf16, #tpu.memory_space<vmem>>, vector<1x16x8xbf16>,
      %48 = vector.extract_strided_slice %42 {offsets = [1, 0, 0], sizes = [1, 16, 8], strides = [1, 1, 1]} : vector<4x16x8xbf16> to vector<1x16x8xbf16>
      %49 = vector.shape_cast %48 : vector<1x16x8xbf16> to vector<16x8xbf16>
      %c0_39 = arith.constant 0 : index
      %c0_40 = arith.constant 0 : index
      %c8 = arith.constant 8 : index
      %50 = vector.load %arg7[%c0_39, %c0_40, %c8] : memref<1x16x32xbf16, #tpu.memory_space<vmem>>, vector<1x16x8xbf16>
      %51 = vector.shape_cast %50 : vector<1x16x8xbf16> to vector<16x8xbf16>
      %52 = vector.shape_cast %49 : vector<16x8xbf16> to vector<1x16x8xbf16>
      tpu.vector_store %arg7[%c0_39, %c0_40, %c8], %52 {strides = array<i32>} : memref<1x16x32xbf16, #tpu.memory_space<vmem>>, vector<1x16x8xbf16>,
      %53 = vector.extract_strided_slice %42 {offsets = [2, 0, 0], sizes = [1, 16, 8], strides = [1, 1, 1]} : vector<4x16x8xbf16> to vector<1x16x8xbf16>
      %54 = vector.shape_cast %53 : vector<1x16x8xbf16> to vector<16x8xbf16>
      %c0_41 = arith.constant 0 : index
      %c0_42 = arith.constant 0 : index
      %c16 = arith.constant 16 : index
      %55 = vector.load %arg7[%c0_41, %c0_42, %c16] : memref<1x16x32xbf16, #tpu.memory_space<vmem>>, vector<1x16x8xbf16>
      %56 = vector.shape_cast %55 : vector<1x16x8xbf16> to vector<16x8xbf16>
      %57 = vector.shape_cast %54 : vector<16x8xbf16> to vector<1x16x8xbf16>
      tpu.vector_store %arg7[%c0_41, %c0_42, %c16], %57 {strides = array<i32>} : memref<1x16x32xbf16, #tpu.memory_space<vmem>>, vector<1x16x8xbf16>,
      %58 = vector.extract_strided_slice %42 {offsets = [3, 0, 0], sizes = [1, 16, 8], strides = [1, 1, 1]} : vector<4x16x8xbf16> to vector<1x16x8xbf16>
      %59 = vector.shape_cast %58 : vector<1x16x8xbf16> to vector<16x8xbf16>
      %c0_43 = arith.constant 0 : index
      %c0_44 = arith.constant 0 : index
      %c24 = arith.constant 24 : index
      %60 = vector.load %arg7[%c0_43, %c0_44, %c24] : memref<1x16x32xbf16, #tpu.memory_space<vmem>>, vector<1x16x8xbf16>
      %61 = vector.shape_cast %60 : vector<1x16x8xbf16> to vector<16x8xbf16>
      %62 = vector.shape_cast %59 : vector<16x8xbf16> to vector<1x16x8xbf16>
      tpu.vector_store %arg7[%c0_43, %c0_44, %c24], %62 {strides = array<i32>} : memref<1x16x32xbf16, #tpu.memory_space<vmem>>, vector<1x16x8xbf16>,
    } else {
    }
    return
  }
  func.func @transform_0(%arg0: i32, %arg1: i32, %arg2: i32, %arg3: i32) -> (i32, i32, i32, i32) {
    %c0_i32 = arith.constant 0 : i32
    %c0_i32_0 = arith.constant 0 : i32
    return %arg0, %arg1, %arg2, %c0_i32 : i32, i32, i32, i32
  }
  func.func @transform_1(%arg0: i32, %arg1: i32, %arg2: i32, %arg3: i32) -> (i32, i32, i32, i32) {
    %c0_i32 = arith.constant 0 : i32
    %c0_i32_0 = arith.constant 0 : i32
    return %arg0, %arg1, %c0_i32, %arg3 : i32, i32, i32, i32
  }
  func.func @transform_2(%arg0: i32, %arg1: i32, %arg2: i32, %arg3: i32) -> (i32, i32, i32, i32) {
    %c0_i32 = arith.constant 0 : i32
    %c0_i32_0 = arith.constant 0 : i32
    return %arg0, %arg1, %arg3, %c0_i32 : i32, i32, i32, i32
  }
  func.func @transform_3(%arg0: i32, %arg1: i32, %arg2: i32, %arg3: i32) -> (i32, i32, i32) {
    %c0_i32 = arith.constant 0 : i32
    return %arg0, %arg2, %arg1 : i32, i32, i32
  }
}

</mosaic_0001>

<bundles_post_ra>
// kernel: tpu_custom_call.1
= control target key start
LH: loop header
LB: loop body
LE: loop exit
PB: predicated region body
PF: predicated region fallthrough
CT: control target
= control target key end

     0   :  { %8 = vsyncpa [#allocation6], 0  ;;  %s1687_s0 = inlined_call_operand.vmem [shape: bf16[2,4,16,8], index: 0, kind: input, shape index: {}]   ;;  %s1688_s1 = inlined_call_operand.vmem [shape: bf16[2,4,8,16], index: 1, kind: input, shape index: {}]   ;;  %s1689_s2 = inlined_call_operand.vmem [shape: bf16[2,4,16,8], index: 2, kind: input, shape index: {}]   ;;  %s1690_s3 = inlined_call_operand.hbm [shape: bf16[2,16,32], index: 3, kind: output, shape index: {}]  }
   0x1   :  { %10 = vsyncpa [#allocation6 + $0x1], 0  ;;  %s1419_s12 = smov 0   ;;  %s1421_s13 = smov 0  }
   0x2   :  { %s1423_s14 = smov 0   ;;  %s1425_s15 = smov 0  }
   0x3   :  { %s1427_s16 = smov 0   ;;  %s1429_s17 = smov 0  }
   0x4 LB: > { %s1144_s18 = sadd.s32 4294967295, %s1390_s17   ;;  %s1145_s19 = sadd.s32 4294967294, %s1390_s17   ;;  %s1390_s17 = sphi %s1429_s17, %s16_s17   ;;  %s1386_s16 = sphi %s1427_s16, %s1697_s16   ;;  %s1382_s15 = sphi %s1425_s15, %s1696_s15   ;;  %s1378_s14 = sphi %s1423_s14, %s1695_s14   ;;  %s1374_s13 = sphi %s1421_s13, %s1694_s13   ;;  %s1370_s12 = sphi %s1419_s12, %s1693_s12  }
   0x5   : > { %s42_s20 = sadd.s32 1, %s1386_s16  ;;  %s143_s21 = sadd.s32 1, %s1378_s14 }
   0x6   : > { %p44_p0 = scmp.ge.s32.totalorder %s42_s20, 2  ;;  %p153_p1 = scmp.ne.s32.totalorder %s1378_s14, %s1374_s13 }
   0x7   : > { %p154_p2 = scmp.eq.s32.totalorder %s1144_s18, 1  ;;  %p159_p3 = scmp.ne.s32.totalorder %s1374_s13, %s1370_s12 }
   0x8   : > { %s1699_s20 = smov (%p44_p0, %s42_s20), 0  ;;  %p160_p5 = scmp.eq.s32.totalorder %s1145_s19, 1 }
   0x9   : > { %p1459_p4 = por %p154_p2, %p153_p1  ;;  %s136_s23 = ssub.s32 %s1386_s16, %s1699_s20 }
   0xa   : > { %p1148_p6 = scmp.ge.s32.totalorder %s1390_s17, 1  ;;  %p141_p7 = scmp.eq.s32.totalorder %s136_s23, 0 }
   0xb   : > { %p1466_p8 = por %p160_p5, %p159_p3  ;;  %p232_p9 = scmp.lt.s32.totalorder %s1390_s17, 3 }
   0xc   : > { %s1472_s25 = scalar_select %p141_p7, %s1378_s14, %s143_s21  }
   0xd   : > { %p233_p10 = pnand %p1148_p6, %p232_p9 }
   0xe   : > { %p293_p11 = scmp.lt.s32.totalorder (!%p233_p10), %s1382_s15, 1  ;;  %s1394_s11 = smov (!%p233_p10), 8  }
   0xf   : > { %236 = sbr.rel (%p233_p10) target bundleno = 848 (0x350), region = 32  ;;  %s1395_s18 = smov (!%p233_p10), 16  }
  0x10   : > { %s288_s19 = sand.u32 (!%p233_p10), 1, %s1374_s13   ;;  %s1396_s21 = smov (!%p233_p10), 24  }
  0x11   : > { %s1149_s23 = sshll.u32 (!%p233_p10), %s288_s19, 3 }
  0x14   : > { %s1476_s26 = scalar_select %p293_p11, %s1382_s15, 1  ;;  %vm383_vm0 = vcmask 1043456   ;;  %vm345_vm1 = vcmask 64512   ;;  %vm477_vm2 = vcmask 130048   ;;  %v510_v28 = vlaneseq }
  0x15   : > { %vm342_vm3 = vcmask 125952   ;;  %v1392_v29 = vmov -inf   ;;  %v1393_v32 = vmov 0.0   ;;  %vm515_vm4 = vcmask 130112  }
  0x16   : > { %s1201_s27 = sshll.u32 %s1476_s26, 5  ;;  %s1202_s28 = sshll.u32 %s1476_s26, 4  ;;  %343 = vst.msk [vmem:[#allocation2] sm:$0xf] %vm342_vm3, %v1392_v29  ;;  %v1525_v30 = vshrl.u32 %v510_v28, 7  ;;  %v1542_v35 = vand.u32 127, %v510_v28 }
  0x17   : > { %s304_s4 = scalar_lea.vmem %s1687_s0, %s1201_s27  ;;  %s318_s7 = scalar_lea.vmem %s1688_s1, %s1202_s28  ;;  %344 = vst.msk [vmem:[#allocation3] sm:$0xf] %vm342_vm3, %v1393_v32  ;;  %vm526_vm5 = vcmask 1041409   ;;  %vm528_vm6 = vcmask 1042434   ;;  %vm530_vm7 = vcmask 1043459   ;;  %vm952_vm8 = vcmask 60416  }
  0x18   : > { %v362_v0 = vld [vmem:[%s318_s7] sm:$0xf]  ;;  %v363_v1 = vld [vmem:[%s318_s7 + $0x4] sm:$0xf]  ;;  %v364_v2 = vld [vmem:[%s318_s7 + $0x8] sm:$0xf]  ;;  %1277 = vset.pattern.permute.xlu1 %v1525_v30  ;;  %1275 = vset.pattern.permute.xlu2 %v1525_v30  ;;  %s333_s10 = scalar_lea.vmem %s1689_s2, %s1201_s27 }
  0x19   : > { %v385_v3 = vsel %vm383_vm0, %v362_v0, 0  ;;  %v410_v4 = vsel %vm383_vm0, %v363_v1, 0  ;;  %v435_v5 = vsel %vm383_vm0, %v364_v2, 0  ;;  %v365_v6 = vld [vmem:[%s318_s7 + $0xc] sm:$0xf]  ;;  %v1204_v7 = vld [vmem:[%s304_s4] sm:$0xff] }
  0x1a   : > { %394 = vmatpush.bf16.msra.mxu0 %v385_v3  ;;  %419 = vmatpush.bf16.msra.mxu1 %v410_v4  ;;  %v460_v8 = vsel %vm383_vm0, %v365_v6, 0  ;;  %v1205_v9 = vld [vmem:[%s304_s4 + $0x8] sm:$0xff]  ;;  %v1206_v10 = vld [vmem:[%s304_s4 + $0x10] sm:$0xff]  ;;  %v1207_v11 = vld [vmem:[%s304_s4 + $0x18] sm:$0xff]  ;;  %v1530_v31 = vadd.s32 8, %v1525_v30  ;;  %346 = vst.msk [vmem:[#allocation4] sm:$0xff] %vm345_vm1, %v1393_v32 }
  0x1b   : > { %444 = vmatpush.bf16.msra.mxu2 %v435_v5  ;;  %469 = vmatpush.bf16.msra.mxu3 %v460_v8  ;;  %347 = vst.msk [vmem:[#allocation4 + $0x8] sm:$0xff] %vm345_vm1, %v1393_v32  ;;  %v1545_v37 = vadd.s32 4294967288, %v1542_v35  ;;  %v1210_v1 = vld [vmem:[%s333_s10 + $0x10] sm:$0xff]  ;;  %v1211_v2 = vld [vmem:[%s333_s10 + $0x18] sm:$0xff]  ;;  %s290_s26 = scalar_lea.vmem [#allocation5], %s1149_s23  ;;  %vm963_vm9 = vcmask 126016  }
  0x1c   : > { %1276 = vset.pattern.permute.xlu0 %v1530_v31  ;;  %348 = vst.msk [vmem:[#allocation4 + $0x10] sm:$0xff] %vm345_vm1, %v1393_v32  ;;  %vm974_vm10 = vcmask 191616   ;;  %s1212_s27 = sshll.u32 %s1382_s15, 3  ;;  %vm985_vm11 = vcmask 257216   ;;  %s1004_s4 = sshll.u32 %s290_s26, 4  ;;  %s1005_s4 = int_to_ptr.vmem [resolvable:$true] %s1004_s4 }
  0x1d   : > { %1160 = vmatmul.msk.bf16.vlgmr.msra.gmra.mxu0 %vm345_vm1, %v1204_v7  ;;  %1165 = vmatmul.msk.bf16.vlgmr.msra.gmra.mxu1 %vm345_vm1, %v1205_v9  ;;  %349 = vst.msk [vmem:[#allocation4 + $0x18] sm:$0xff] %vm345_vm1, %v1393_v32  ;;  %v1559_v55 = vld [vmem:[#allocation2] sm:$0xf]  ;;  %v1209_v9 = vld [vmem:[%s333_s10 + $0x8] sm:$0xff]  ;;  %s1003_s30 = scalar_lea.hbm %s1690_s3, %s1212_s27  ;;  %s989_s15 = scalar_lea.sflag [#allocation6], %s288_s19 }
  0x1e   : > { %1170 = vmatmul.msk.bf16.vlgmr.msra.gmra.mxu2 %vm345_vm1, %v1206_v10  ;;  %1175 = vmatmul.msk.bf16.vlgmr.msra.gmra.mxu3 %vm345_vm1, %v1207_v11  ;;  %350 = vst.msk [vmem:[#allocation4 + $0x20] sm:$0xff] %vm345_vm1, %v1393_v32  ;;  %s1006_s5 = sshll.u32 %s1003_s30, 4  ;;  %s1007_s5 = int_to_ptr.hbm [resolvable:$true] %s1006_s5 }
  0x1f   : > { %351 = vst.msk [vmem:[#allocation4 + $0x28] sm:$0xff] %vm345_vm1, %v1393_v32  ;;  %819 = vmatpush.bf16.msrb.mxu2 %v1210_v1  ;;  %847 = vmatpush.bf16.msrb.mxu3 %v1211_v2  ;;  %s1326_s6 = sshra.s32 %s1007_s5, 4  ;;  %s1327_s6 = int_to_ptr.hbm [resolvable:$true] %s1326_s6 }
  0x20   : > { %352 = vst.msk [vmem:[#allocation4 + $0x30] sm:$0xff] %vm345_vm1, %v1393_v32  ;;  %791 = vmatpush.bf16.msrb.mxu1 %v1209_v9  ;;  %s1328_s7 = scalar_lea.hbm %s1327_s6, 8  ;;  %p1333_p1 = scmp.lt.s32.totalorder %s1327_s6, %s1690_s3 }
  0x21   : > { %353 = vst.msk [vmem:[#allocation4 + $0x38] sm:$0xff] %vm345_vm1, %v1393_v32  ;;  %p1329_p12 = scmp.ne.s32.totalorder %s1327_s6, %s1328_s7 }
  0x23   : > { %p1330_p13 = pnand %p1329_p12, %p1459_p4 }
  0x25   : > { %p1331_p0 = pneg %p1330_p13 }
  0x9a   : > { %v1492_v12 = vpop.f32.mrf.mxu0  ;;  %v1494_v13 = vpop.f32.mrf.mxu1 }
  0x9b   : > { %v484_v14 = vsel %vm477_vm2, %v1494_v13, -inf  ;;  %v478_v15 = vsel %vm477_vm2, %v1492_v12, -inf }
  0x9c   : > { %485 = vmax.xlane.f32.xlu1 %v484_v14  ;;  %479 = vmax.xlane.f32.xlu0 %v478_v15 }
  0xa1   : > { %v1500_v16 = vpop.f32.mrf.mxu2  ;;  %v1502_v17 = vpop.f32.mrf.mxu3 }
  0xa2   : > { %v490_v18 = vsel %vm477_vm2, %v1500_v16, -inf  ;;  %v1506_v19 = vpop.f32.mrf.mxu0  ;;  %v1508_v20 = vpop.f32.mrf.mxu1  ;;  %v496_v27 = vsel %vm477_vm2, %v1502_v17, -inf }
  0xa3   : > { %491 = vmax.xlane.f32.xlu2 %v490_v18  ;;  %v487_v21 = vsel %vm477_vm2, %v1508_v20, -inf  ;;  %v481_v22 = vsel %vm477_vm2, %v1506_v19, -inf }
  0xa4   : > { %488 = vmax.xlane.f32.xlu1 %v487_v21  ;;  %482 = vmax.xlane.f32.xlu0 %v481_v22  ;;  %v1208_v22 = vld [vmem:[%s333_s10] sm:$0xff]  ;;  %s1332_s10 = scalar_lea.hbm %s1690_s3, 16 }
  0xa5   : > { %763 = vmatpush.bf16.msrb.mxu0 %v1208_v22  ;;  %p1334_p2 = scmp.lt.s32.totalorder %s1332_s10, %s1328_s7 }
  0xa7   : > { %p1335_p3 = por %p1334_p2, %p1333_p1 }
  0xa9   : > { %v1514_v23 = vpop.f32.mrf.mxu2  ;;  %v1516_v24 = vpop.f32.mrf.mxu3  ;;  %p1336_p5 = pnand %p1335_p3, %p1331_p0 }
  0xaa   : > { %v493_v25 = vsel %vm477_vm2, %v1514_v23, -inf  ;;  %v499_v26 = vsel %vm477_vm2, %v1516_v24, -inf }
  0xab   : > { %494 = vmax.xlane.f32.xlu2 %v493_v25 }
  0xac   : > { %500 = vmax.xlane.f32.xlu1 %v499_v26  ;;  %497 = vmax.xlane.f32.xlu0 %v496_v27 }
 0x10f   : > { %v486_v33 = vpop.xlane.xlu1 %485  ;;  %v480_v34 = vpop.xlane.xlu0 %479 }
 0x110   : > { %v517_v42 = vperm.slane %v486_v33, %v1542_v35  ;;  %v512_v43 = vperm.slane %v480_v34, %v1542_v35 }
 0x116   : > { %v492_v36 = vpop.xlane.xlu2 %491 }
 0x117   : > { %v489_v38 = vpop.xlane.xlu1 %488  ;;  %v483_v39 = vpop.xlane.xlu0 %482  ;;  %v520_v47 = vperm.slane %v492_v36, %v1542_v35 }
 0x118   : > { %v518_v40 = vperm.slane %v489_v38, %v1545_v37  ;;  %v514_v41 = vperm.slane %v483_v39, %v1545_v37 }
 0x11a   : > { %v519_v44 = vsel %vm515_vm4, %v518_v40, %v517_v42  ;;  %v516_v45 = vsel %vm515_vm4, %v514_v41, %v512_v43 }
 0x11b   : > { %v527_v53 = vsel %vm526_vm5, %v519_v44, %v516_v45 }
 0x11e   : > { %v495_v46 = vpop.xlane.xlu2 %494 }
 0x11f   : > { %v521_v48 = vperm.slane %v495_v46, %v1545_v37  ;;  %v501_v49 = vpop.xlane.xlu1 %500  ;;  %v498_v50 = vpop.xlane.xlu0 %497 }
 0x120   : > { %v524_v51 = vperm.slane %v501_v49, %v1545_v37  ;;  %v523_v52 = vperm.slane %v498_v50, %v1542_v35 }
 0x121   : > { %v522_v54 = vsel %vm515_vm4, %v521_v48, %v520_v47 }
 0x122   : > { %v529_v56 = vsel %vm528_vm6, %v522_v54, %v527_v53  ;;  %v525_v57 = vsel %vm515_vm4, %v524_v51, %v523_v52 }
 0x123   : > { %v531_v58 = vsel %vm530_vm7, %v525_v57, %v529_v56 }
 0x124   : > { %v1565_v59 = vmax.f32 %v1559_v55, %v531_v58 }
 0x126   : > { %v534_v60 = vsub.f32 %v1559_v55, %v1565_v59  ;;  %870 = vst.msk [vmem:[#allocation2] sm:$0xf] %vm342_vm3, %v1565_v59  ;;  %v576_v61 = vperm.slane %v1565_v59, 3  ;;  %v563_v62 = vperm.slane %v1565_v59, 2  ;;  %v550_v63 = vperm.slane %v1565_v59, 1 }
 0x127   : > { %v537_v0 = vperm.slane %v1565_v59, 0 }
 0x128   : > { %581 = vperm.xlu1 %1277, %v576_v61   ;;  %574 = vperm.xlu0 %1276, %v563_v62  }
 0x129   : > { %568 = vperm.xlu2 %1275, %v563_v62  }
 0x130   : > { %1280 = vset.pattern.permute.xlu1 %v1530_v31  ;;  %1283 = vset.pattern.permute.xlu0 %v1525_v30 }
 0x131   : > { %1278 = vset.pattern.permute.xlu2 %v1530_v31 }
 0x138   : > { %561 = vperm.xlu1 %1280, %v550_v63  }
 0x139   : > { %587 = vperm.xlu2 %1278, %v576_v61  }
 0x140   : > { %548 = vperm.xlu1 %1280, %v537_v0  }
 0x141   : > { %1279 = vset.pattern.permute.xlu2 %v1525_v30 }
 0x148   : > { %1281 = vset.pattern.permute.xlu1 %v1525_v30 }
 0x149   : > { %555 = vperm.xlu2 %1279, %v550_v63  }
 0x151   : > { %542 = vperm.xlu2 %1279, %v537_v0  }
 0x159   : > { %1282 = vset.pattern.permute.xlu2 %v1530_v31 }
 0x183   : > { %v569_v3 = vpop.permute.xlu2 %568 }
 0x184   : > { %v593_v5 = vsub.f32 %v1500_v16, %v569_v3 }
 0x186   : > { %v605_v8 = vmul.f32 1.442695, %v593_v5 }
 0x193   : > { %v588_v4 = vpop.permute.xlu2 %587 }
 0x194   : > { %v596_v6 = vsub.f32 %v1516_v24, %v588_v4  ;;  %v535_v4 = vmul.f32 1.442695, %v534_v60 }
 0x196   : > { %v611_v7 = vmul.f32 1.442695, %v596_v6 }
 0x198   : > { %1292 = vpow2.f32 %v611_v7 }
 0x199   : > { %1294 = vpow2.f32 %v605_v8 }
 0x19a   : > { %v582_v10 = vpop.permute.xlu1 %581  ;;  %v575_v11 = vpop.permute.xlu0 %574 }
 0x19b   : > { %v595_v14 = vsub.f32 %v1502_v17, %v582_v10  ;;  %v594_v15 = vsub.f32 %v1514_v23, %v575_v11 }
 0x19d   : > { %v609_v18 = vmul.f32 1.442695, %v595_v14  ;;  %v607_v21 = vmul.f32 1.442695, %v594_v15 }
 0x19e   : > { %v1590_v16 = vpop.eup %1292 }
 0x19f   : > { %1296 = vpow2.f32 %v609_v18  ;;  %v1295_v24 = vpop.eup %1294  ;;  %v741_v26 = vpack.c.bf16 %v1590_v16, %v1590_v16  ;;  %v636_v7 = vsel %vm477_vm2, %v1590_v16, 0.0 }
 0x1a0   : > { %1298 = vpow2.f32 %v607_v21  ;;  %v738_v17 = vpack.c.bf16 %v1295_v24, %v1295_v24  ;;  %v627_v1 = vsel %vm477_vm2, %v1295_v24, 0.0 }
 0x1a1   : > { %v829_v34 = vunpack.c.l.b16 %v741_v26 }
 0x1a2   : > { %v800_v38 = vunpack.c.l.b16 %v738_v17 }
 0x1a3   : > { %v556_v25 = vpop.permute.xlu2 %555 }
 0x1a4   : > { %v591_v27 = vsub.f32 %v1494_v13, %v556_v25 }
 0x1a5   : > { %v1297_v28 = vpop.eup %1296 }
 0x1a6   : > { %v1299_v29 = vpop.eup %1298  ;;  %v740_v23 = vpack.c.bf16 %v1297_v28, %v1297_v28  ;;  %v601_v32 = vmul.f32 1.442695, %v591_v27  ;;  %v633_v9 = vsel %vm477_vm2, %v1297_v28, 0.0 }
 0x1a7   : > { %v739_v33 = vpack.c.bf16 %v1299_v29, %v1299_v29  ;;  %v630_v54 = vsel %vm477_vm2, %v1299_v29, 0.0 }
 0x1a8   : > { %v828_v36 = vunpack.c.l.b16 %v740_v23  ;;  %1300 = vpow2.f32 %v601_v32  ;;  %v718_v23 = vld [vmem:[#allocation4] sm:$0xff] }
 0x1a9   : > { %v801_v39 = vunpack.c.l.b16 %v739_v33 }
 0x1aa   : > { %v562_v40 = vpop.permute.xlu1 %561  ;;  %v830_v41 = vpack.c.b16 %v829_v34, %v828_v36  ;;  %v613_v36 = vld [vmem:[#allocation3] sm:$0xf] }
 0x1ab   : > { %v592_v42 = vsub.f32 %v1508_v20, %v562_v40  ;;  %v543_v43 = vpop.permute.xlu2 %542  ;;  %v802_v44 = vpack.c.b16 %v801_v39, %v800_v38 }
 0x1ac   : > { %v589_v45 = vsub.f32 %v1492_v12, %v543_v43  ;;  %1195 = vmatmul.msk.bf16.vlgmr.msrb.gmra.mxu3 %vm477_vm2, %v830_v41 }
 0x1ad   : > { %v603_v13 = vmul.f32 1.442695, %v592_v42  ;;  %1190 = vmatmul.msk.bf16.vlgmr.msrb.gmra.mxu2 %vm477_vm2, %v802_v44 }
 0x1ae   : > { %v1301_v46 = vpop.eup %1300  ;;  %v597_v47 = vmul.f32 1.442695, %v589_v45 }
 0x1af   : > { %1302 = vpow2.f32 %v603_v13  ;;  %v621_v48 = vsel %vm477_vm2, %v1301_v46, 0.0  ;;  %v736_v20 = vpack.c.bf16 %v1301_v46, %v1301_v46 }
 0x1b0   : > { %1304 = vpow2.f32 %v597_v47  ;;  %622 = vadd.xlane.f32.xlu1 %v621_v48 }
 0x1b1   : > { %v772_v57 = vunpack.c.l.b16 %v736_v20 }
 0x1b2   : > { %v549_v49 = vpop.permute.xlu1 %548 }
 0x1b3   : > { %v590_v50 = vsub.f32 %v1506_v19, %v549_v49  ;;  %v719_v49 = vld [vmem:[#allocation4 + $0x8] sm:$0xff] }
 0x1b5   : > { %v1303_v51 = vpop.eup %1302  ;;  %v599_v52 = vmul.f32 1.442695, %v590_v50 }
 0x1b6   : > { %v1305_v53 = vpop.eup %1304  ;;  %v737_v12 = vpack.c.bf16 %v1303_v51, %v1303_v51  ;;  %v624_v6 = vsel %vm477_vm2, %v1303_v51, 0.0  ;;  %v720_v51 = vld [vmem:[#allocation4 + $0x10] sm:$0xff] }
 0x1b7   : > { %1306 = vpow2.f32 %v599_v52  ;;  %v615_v56 = vsel %vm477_vm2, %v1305_v53, 0.0  ;;  %v734_v62 = vpack.c.bf16 %v1305_v53, %v1305_v53 }
 0x1b8   : > { %v773_v58 = vunpack.c.l.b16 %v737_v12  ;;  %631 = vadd.xlane.f32.xlu1 %v630_v54  ;;  %616 = vadd.xlane.f32.xlu0 %v615_v56  ;;  %1308 = vpow2.f32 %v535_v4  ;;  %v722_v54 = vld [vmem:[#allocation4 + $0x20] sm:$0xff] }
 0x1b9   : > { %v744_v2 = vunpack.c.l.b16 %v734_v62 }
 0x1ba   : > { %v774_v61 = vpack.c.b16 %v773_v58, %v772_v57  ;;  %v721_v58 = vld [vmem:[#allocation4 + $0x18] sm:$0xff] }
 0x1bc   : > { %1185 = vmatmul.msk.bf16.vlgmr.msrb.gmra.mxu1 %vm477_vm2, %v774_v61 }
 0x1bd   : > { %v1307_v63 = vpop.eup %1306 }
 0x1be   : > { %v735_v19 = vpack.c.bf16 %v1307_v63, %v1307_v63  ;;  %v618_v0 = vsel %vm477_vm2, %v1307_v63, 0.0  ;;  %v1309_v8 = vpop.eup %1308 }
 0x1bf   : > { %619 = vadd.xlane.f32.xlu2 %v618_v0  ;;  %v666_v10 = vperm.slane %v1309_v8, 0  ;;  %v679_v55 = vperm.slane %v1309_v8, 1  ;;  %v692_v59 = vperm.slane %v1309_v8, 2  ;;  %v705_v60 = vperm.slane %v1309_v8, 3 }
 0x1c0   : > { %v745_v3 = vunpack.c.l.b16 %v735_v19  ;;  %628 = vadd.xlane.f32.xlu0 %v627_v1  ;;  %v614_v45 = vmul.f32 %v1309_v8, %v613_v36  ;;  %v723_v8 = vld [vmem:[#allocation4 + $0x28] sm:$0xff] }
 0x1c2   : > { %v746_v5 = vpack.c.b16 %v745_v3, %v744_v2 }
 0x1c4   : > { %1180 = vmatmul.msk.bf16.vlgmr.msrb.gmra.mxu0 %vm477_vm2, %v746_v5  ;;  %v724_v5 = vld [vmem:[#allocation4 + $0x30] sm:$0xff] }
 0x1c7   : > { %625 = vadd.xlane.f32.xlu2 %v624_v6 }
 0x1c8   : > { %637 = vadd.xlane.f32.xlu0 %v636_v7 }
 0x1cf   : > { %634 = vadd.xlane.f32.xlu2 %v633_v9 }
 0x1d1   : > { %671 = vperm.xlu1 %1281, %v666_v10  }
 0x1d9   : > { %1284 = vset.pattern.permute.xlu1 %v1530_v31 }
 0x1dc   : > { %684 = vperm.xlu0 %1283, %v679_v55  }
 0x1e1   : > { %690 = vperm.xlu1 %1284, %v679_v55  }
 0x1e4   : > { %1286 = vset.pattern.permute.xlu0 %v1530_v31 }
 0x1e7   : > { %677 = vperm.xlu2 %1282, %v666_v10  }
 0x1e9   : > { %703 = vperm.xlu1 %1284, %v692_v59  }
 0x1ef   : > { %1285 = vset.pattern.permute.xlu2 %v1525_v30 }
 0x1f1   : > { %716 = vperm.xlu1 %1284, %v705_v60  }
 0x1f7   : > { %697 = vperm.xlu2 %1285, %v692_v59  }
 0x1f9   : > { %1287 = vset.pattern.permute.xlu1 %v1525_v30 }
 0x1ff   : > { %710 = vperm.xlu2 %1285, %v705_v60  }
 0x223   : > { %v623_v14 = vpop.xlane.xlu1 %622 }
 0x224   : > { %v650_v24 = vperm.slane %v623_v14, %v1542_v35 }
 0x22b   : > { %v617_v11 = vpop.xlane.xlu0 %616  ;;  %v632_v22 = vpop.xlane.xlu1 %631 }
 0x22c   : > { %v647_v26 = vperm.slane %v617_v11, %v1542_v35  ;;  %v654_v32 = vperm.slane %v632_v22, %v1545_v37 }
 0x22f   : > { %v849_v10 = vpop.f32.mrf.mxu3 }
 0x230   : > { %v821_v62 = vpop.f32.mrf.mxu2 }
 0x232   : > { %v620_v15 = vpop.xlane.xlu2 %619 }
 0x233   : > { %v629_v18 = vpop.xlane.xlu0 %628  ;;  %v648_v25 = vperm.slane %v620_v15, %v1545_v37 }
 0x234   : > { %v653_v28 = vperm.slane %v629_v18, %v1542_v35 }
 0x235   : > { %v649_v29 = vsel %vm515_vm4, %v648_v25, %v647_v26 }
 0x236   : > { %v655_v42 = vsel %vm515_vm4, %v654_v32, %v653_v28 }
 0x238   : > { %v823_v11 = vpop.f32.mrf.mxu2 }
 0x23a   : > { %v626_v21 = vpop.xlane.xlu2 %625 }
 0x23b   : > { %v651_v16 = vperm.slane %v626_v21, %v1545_v37  ;;  %v638_v17 = vpop.xlane.xlu0 %637  ;;  %v725_v21 = vld [vmem:[#allocation4 + $0x38] sm:$0xff] }
 0x23c   : > { %v657_v39 = vperm.slane %v638_v17, %v1545_v37 }
 0x23d   : > { %v652_v27 = vsel %vm515_vm4, %v651_v16, %v650_v24  ;;  %v851_v24 = vpop.f32.mrf.mxu3 }
 0x23e   : > { %v659_v33 = vsel %vm526_vm5, %v652_v27, %v649_v29 }
 0x23f   : > { %v660_v44 = vsel %vm528_vm6, %v655_v42, %v659_v33 }
 0x241   : > { %v765_v34 = vpop.f32.mrf.mxu0 }
 0x242   : > { %v635_v38 = vpop.xlane.xlu2 %634 }
 0x243   : > { %v656_v40 = vperm.slane %v635_v38, %v1542_v35  ;;  %v672_v41 = vpop.permute.xlu1 %671  ;;  %v793_v35 = vpop.f32.mrf.mxu1 }
 0x244   : > { %v726_v43 = vmul.f32 %v718_v23, %v672_v41 }
 0x245   : > { %v658_v13 = vsel %vm515_vm4, %v657_v39, %v656_v40 }
 0x246   : > { %v661_v46 = vsel %vm530_vm7, %v658_v13, %v660_v44  ;;  %v854_v47 = vadd.f32 %v765_v34, %v726_v43 }
 0x247   : > { %v663_v48 = vadd.f32 %v661_v46, %v614_v45 }
 0x248   : > { %862 = vst.msk [vmem:[#allocation4] sm:$0xff] %vm345_vm1, %v854_v47 }
 0x249   : > { %665 = vst.msk [vmem:[#allocation3] sm:$0xf] %vm342_vm3, %v663_v48  ;;  %v767_v20 = vpop.f32.mrf.mxu0 }
 0x24a   : > { %v678_v37 = vpop.permute.xlu2 %677 }
 0x24b   : > { %v727_v50 = vmul.f32 %v719_v49, %v678_v37  ;;  %v795_v1 = vpop.f32.mrf.mxu1 }
 0x24d   : > { %v855_v52 = vadd.f32 %v767_v20, %v727_v50 }
 0x24e   : > { %v685_v53 = vpop.permute.xlu0 %684 }
 0x24f   : > { %863 = vst.msk [vmem:[#allocation4 + $0x8] sm:$0xff] %vm345_vm1, %v855_v52  ;;  %v728_v12 = vmul.f32 %v720_v51, %v685_v53  ;;  %v876_v37 = vld [vmem:[#allocation4] sm:$0xff] }
 0x250   : > { %v874_v56 = vld [vmem:[#allocation3] sm:$0xf] }
 0x251   : > { %v856_v57 = vadd.f32 %v793_v35, %v728_v12  ;;  %1310 = vrcp.f32 %v874_v56 }
 0x252   : > { %v698_v61 = vpop.permute.xlu2 %697 }
 0x253   : > { %864 = vst.msk [vmem:[#allocation4 + $0x10] sm:$0xff] %vm345_vm1, %v856_v57  ;;  %v730_v63 = vmul.f32 %v722_v54, %v698_v61  ;;  %v691_v19 = vpop.permute.xlu1 %690 }
 0x254   : > { %v729_v0 = vmul.f32 %v721_v58, %v691_v19 }
 0x255   : > { %v858_v2 = vadd.f32 %v821_v62, %v730_v63 }
 0x256   : > { %v857_v3 = vadd.f32 %v795_v1, %v729_v0  ;;  %v877_v51 = vld [vmem:[#allocation4 + $0x8] sm:$0xff] }
 0x257   : > { %v1311_v4 = vpop.eup %1310  ;;  %866 = vst.msk [vmem:[#allocation4 + $0x20] sm:$0xff] %vm345_vm1, %v858_v2 }
 0x258   : > { %865 = vst.msk [vmem:[#allocation4 + $0x18] sm:$0xff] %vm345_vm1, %v857_v3  ;;  %v910_v6 = vperm.slane %v1311_v4, 2  ;;  %v897_v7 = vperm.slane %v1311_v4, 1  ;;  %v923_v18 = vperm.slane %v1311_v4, 3  ;;  %v884_v26 = vperm.slane %v1311_v4, 0 }
 0x25a   : > { %v711_v9 = vpop.permute.xlu2 %710  ;;  %915 = vperm.xlu1 %1287, %v910_v6   ;;  %908 = vperm.xlu0 %1286, %v897_v7   ;;  %v878_v27 = vld [vmem:[#allocation4 + $0x10] sm:$0xff] }
 0x25b   : > { %v732_v55 = vmul.f32 %v724_v5, %v711_v9  ;;  %v704_v59 = vpop.permute.xlu1 %703  ;;  %902 = vperm.xlu2 %1285, %v897_v7  }
 0x25c   : > { %v731_v60 = vmul.f32 %v723_v8, %v704_v59 }
 0x25d   : > { %v860_v14 = vadd.f32 %v849_v10, %v732_v55 }
 0x25e   : > { %v859_v15 = vadd.f32 %v823_v11, %v731_v60  ;;  %v880_v34 = vld [vmem:[#allocation4 + $0x20] sm:$0xff] }
 0x25f   : > { %868 = vst.msk [vmem:[#allocation4 + $0x30] sm:$0xff] %vm345_vm1, %v860_v14  ;;  %v879_v38 = vld [vmem:[#allocation4 + $0x18] sm:$0xff] }
 0x260   : > { %867 = vst.msk [vmem:[#allocation4 + $0x28] sm:$0xff] %vm345_vm1, %v859_v15 }
 0x262   : > { %928 = vperm.xlu1 %1287, %v923_v18   ;;  %1289 = vset.pattern.permute.xlu0 %v1525_v30 }
 0x263   : > { %v717_v22 = vpop.permute.xlu1 %716  ;;  %1288 = vset.pattern.permute.xlu2 %v1530_v31 }
 0x264   : > { %v733_v16 = vmul.f32 %v725_v21, %v717_v22 }
 0x266   : > { %v861_v25 = vadd.f32 %v851_v24, %v733_v16  ;;  %v882_v13 = vld [vmem:[#allocation4 + $0x30] sm:$0xff] }
 0x267   : > { %v881_v29 = vld [vmem:[#allocation4 + $0x28] sm:$0xff] }
 0x268   : > { %869 = vst.msk [vmem:[#allocation4 + $0x38] sm:$0xff] %vm345_vm1, %v861_v25 }
 0x26a   : > { %1290 = vset.pattern.permute.xlu1 %v1530_v31  ;;  %889 = vperm.xlu0 %1289, %v884_v26  }
 0x26b   : > { %921 = vperm.xlu2 %1288, %v910_v6  }
 0x26f   : > { %v883_v44 = vld [vmem:[#allocation4 + $0x38] sm:$0xff] }
 0x272   : > { %895 = vperm.xlu1 %1290, %v884_v26   ;;  %1291 = vset.pattern.permute.xlu0 %v1530_v31 }
 0x273   : > { %934 = vperm.xlu2 %1288, %v923_v18  }
 0x2b5   : > { %v903_v28 = vpop.permute.xlu2 %902 }
 0x2b6   : > { %v938_v30 = vmul.f32 %v903_v28, %v878_v27 }
 0x2b8   : > { %v946_v17 = vpack.c.bf16 %v938_v30, %v938_v30 }
 0x2ba   : > { %957 = vrot.lane.b32.xlu2 %v946_v17, %s1394_s11 }
 0x2c5   : > { %v922_v23 = vpop.permute.xlu2 %921 }
 0x2c6   : > { %v941_v32 = vmul.f32 %v922_v23, %v881_v29 }
 0x2c8   : > { %v949_v33 = vpack.c.bf16 %v941_v32, %v941_v32 }
 0x2ca   : > { %970 = vrot.lane.b32.xlu0 %v949_v33, %s1395_s18 }
 0x2cc   : > { %v916_v36 = vpop.permute.xlu1 %915  ;;  %v909_v39 = vpop.permute.xlu0 %908 }
 0x2cd   : > { %v940_v40 = vmul.f32 %v916_v36, %v880_v34  ;;  %v939_v31 = vmul.f32 %v909_v39, %v879_v38  ;;  %v935_v43 = vpop.permute.xlu2 %934 }
 0x2ce   : > { %v943_v45 = vmul.f32 %v935_v43, %v883_v44 }
 0x2cf   : > { %v948_v41 = vpack.c.bf16 %v940_v40, %v940_v40  ;;  %v947_v42 = vpack.c.bf16 %v939_v31, %v939_v31 }
 0x2d0   : > { %v951_v48 = vpack.c.bf16 %v943_v45, %v943_v45 }
 0x2d1   : > { %968 = vrot.lane.b32.xlu2 %v948_v41, %s1395_s18  ;;  %959 = vrot.lane.b32.xlu1 %v947_v42, %s1394_s11 }
 0x2d4   : > { %v929_v46 = vpop.permute.xlu1 %928 }
 0x2d5   : > { %v942_v47 = vmul.f32 %v929_v46, %v882_v13 }
 0x2d7   : > { %v950_v49 = vpack.c.bf16 %v942_v47, %v942_v47 }
 0x2d9   : > { %981 = vrot.lane.b32.xlu2 %v951_v48, %s1396_s21  ;;  %979 = vrot.lane.b32.xlu1 %v950_v49, %s1396_s21 }
 0x2dc   : > { %v890_v35 = vpop.permute.xlu0 %889 }
 0x2dd   : > { %v936_v50 = vmul.f32 %v890_v35, %v876_v37 }
 0x2df   : > { %v944_v20 = vpack.c.bf16 %v936_v50, %v936_v50 }
 0x2e1   : > { %953 = vst.msk [vmem:[%s290_s26] sm:$0xf] %vm952_vm8, %v944_v20 }
 0x2e4   : > { %v896_v52 = vpop.permute.xlu1 %895 }
 0x2e5   : > { %v937_v53 = vmul.f32 %v896_v52, %v877_v51 }
 0x2e7   : > { %v945_v12 = vpack.c.bf16 %v937_v53, %v937_v53 }
 0x2e9   : > { %954 = vst.msk [vmem:[%s290_s26 + $0x4] sm:$0xf] %vm952_vm8, %v945_v12 }
 0x314   : > { %v958_v54 = vpop.permute.xlu2 %957 }
 0x315   : > { %964 = vst.msk [vmem:[%s290_s26] sm:$0xf] %vm963_vm9, %v958_v54 }
 0x32b   : > { %v969_v56 = vpop.permute.xlu2 %968 }
 0x32c   : > { %975 = vst.msk [vmem:[%s290_s26] sm:$0xf] %vm974_vm10, %v969_v56 }
 0x333   : > { %v982_v61 = vpop.permute.xlu2 %981 }
 0x33c   : > { %v971_v58 = vpop.permute.xlu0 %970 }
 0x343   : > { %v960_v57 = vpop.permute.xlu1 %959 }
 0x344   : > { %965 = vst.msk [vmem:[%s290_s26 + $0x4] sm:$0xf] %vm963_vm9, %v960_v57 }
 0x345   : > { %976 = vst.msk [vmem:[%s290_s26 + $0x4] sm:$0xf] %vm974_vm10, %v971_v58 }
 0x346   : > { %987 = vst.msk [vmem:[%s290_s26 + $0x4] sm:$0xf] %vm985_vm11, %v982_v61 }
 0x34b   : > { %v980_v62 = vpop.permute.xlu1 %979 }
 0x34c   : > { %986 = vst.msk [vmem:[%s290_s26] sm:$0xf] %vm985_vm11, %v980_v62 }
 0x34d   : > { %1339 = shalt.err (!%p1336_p5)
}
 0x34e   : > { %s1397_s19 = smov 64   ;;  %s1398_s21 = smov 4  }
 0x34f   : > { %1213 = dma.vmem_to_hbm [thread:$0]  (%p1459_p4), %s1005_s4, 128, %s1007_s5, %s989_s15, %s1397_s19, %s1397_s19, %s1398_s21  }
 0x350 PF: > { %p1219_p6 = scmp.ge.s32.totalorder %s1390_s17, 2  ;;  %s1021_s23 = sand.u32 1, %s1370_s12  }
 0x351   : > { %s1022_s26 = scalar_lea.sflag [#allocation6], %s1021_s23 }
 0x352   : > { %p1216_p7 = pnand %p1219_p6, %p1466_p8 }
 0x354   : > { %p1217_p9 = pneg %p1216_p7 }
 0x356   : > { %1365 = dma.done.wait (%p1217_p9), %s1022_s26, 128  }
 0x357   : > { %1367 = vsyncadd (%p1217_p9), %s1022_s26, 4294967168  ;;  %s16_s17 = sadd.s32 1, %s1390_s17   ;;  %s1693_s12 = smov %s1374_s13 }
 0x358   : > { %p13_p10 = scmp.ge.s32.totalorder %s16_s17, 4   ;;  %s1694_s13 = smov %s1378_s14 }
 0x359   : > { %s1695_s14 = smov %s1472_s25  ;;  %s1696_s15 = smov %s1386_s16 }
 0x35a   : > { %s1697_s16 = smov %s1699_s20  ;;  %15 = sbr.rel (!%p13_p10) target bundleno = 4 (0x4), region = 81 }
 0x35f   :  { %1028 = vsyncpa [#allocation6], 1 }
 0x360   :  { %1030 = vsyncpa [#allocation6 + $0x1], 1 }

</bundles_post_ra>
